<compile_context>
chip_gen: v7x
topology: tpu7x:2x2x1
jax: 0.10.0
libtpu: 0.0.40
codegen_flags: <defaults>
</compile_context>

<pallas_src>
import jax
import jax.numpy as jnp
from jax.experimental import pallas as pl
from jax.experimental.pallas import tpu as pltpu


def resblock_kernel(x_ref, w1_ref, b1_ref, w2_ref, b2_ref, o_ref):
    """One (C, TM) channels-first tile: channels on sublanes, pixels on lanes.

    x_ref : (C, TM) io dtype (f32 or bf16)   activation tile (also the residual)
    wK_ref: (C, C)  compute dtype            1x1 conv weights, BN scale pre-folded
    bK_ref: (C, 1)  f32                      folded BN bias (broadcast along lanes)
    o_ref : (C, TM) out dtype                output tile (lane-dense stores)
    """
    x = x_ref[...]                                   # io dtype, reused as residual
    xc = x.astype(w1_ref.dtype)                      # MXU-native input (no-op if bf16)

    # conv1 (1x1) + BN1 scale (folded into w1); bias + ReLU in f32 on the VPU
    h = jnp.dot(w1_ref[...], xc, preferred_element_type=jnp.float32)
    h = jnp.maximum(h + b1_ref[...], 0.0)

    # conv2 (1x1) + BN2 scale (folded into w2); bias + ReLU in f32
    h = jnp.dot(w2_ref[...], h.astype(w2_ref.dtype),
                preferred_element_type=jnp.float32)
    h = jnp.maximum(h + b2_ref[...], 0.0)

    # residual add (f32) + final ReLU, single lane-dense store
    o_ref[...] = jnp.maximum(h + x.astype(jnp.float32), 0.0).astype(o_ref.dtype)


def _ceil_div(a, b):
    return -(-a // b)


def _vmem_budgets():
    """(data_budget_bytes for tiles/weights, vmem_limit_bytes to hand Mosaic)."""
    try:
        cap = int(pltpu.get_tpu_info().vmem_capacity_bytes)
    except Exception:
        cap = 64 * 1024 * 1024                 # conservative fallback (v7x per-TC)
    # Half of physical VMEM for our data (64 MiB on v5e/v6e, 32 MiB on v7x),
    # explicit scoped limit well above that but with headroom for the compiler.
    data_budget = min(cap // 2, 64 * 1024 * 1024)
    vmem_limit = min(int(cap * 0.75), 100 * 1024 * 1024)
    return data_budget, vmem_limit


def _pick_tile(hw, c, n_batch, *, io_itemsize, data_budget_bytes):
    """Pick the lane-tile width TM.

    Constraints:
      * TM is a multiple of 128, or == hw when hw <= 128 (the (8,128) rule).
      * Double-buffered in/out tiles + in-kernel temporaries + weight tiles fit
        the per-generation VMEM data budget.
      * Keep >= ~8 total grid steps when possible (hide pipeline prologue /
        epilogue DMA) but never drop below 512 lanes while hw allows it.
      * Keep >= 2 parallel iterations so both v7x TensorCores get work.
    """
    if hw <= 128:
        return hw                              # full-extent lane dim is legal

    # VMEM bytes per element of a (C, TM) tile:
    #   pipeline buffers : 2 x in + 2 x out at io_itemsize
    #   kernel temporaries (worst case): x->f32 (4) + xc bf16 (2)
    #                                    + h f32 (4) + h bf16 (2)   = 12 B
    per_elem = 4 * io_itemsize + 12
    fixed = 2 * (2 * c * c * 2) + 2 * (2 * c * 4)    # bf16 weights + f32 biases (x2 bufs)
    max_tm = (data_budget_bytes - fixed) // (per_elem * c)
    max_tm = max(128, (max_tm // 128) * 128)

    hw_padded = _ceil_div(hw, 128) * 128
    tm = min(max_tm, hw_padded)

    # Enough steps to hide prologue/epilogue DMA (but keep TM >= 512 lanes).
    target_steps = 8
    while n_batch * _ceil_div(hw, tm) < target_steps and tm > 512:
        tm = max(512, ((tm // 2) // 128) * 128)
    # Megacore balance: at least 2 parallel iterations when hw allows it.
    if n_batch * _ceil_div(hw, tm) < 2 and tm > 128:
        tm = max(128, ((tm // 2) // 128) * 128)
    return tm


def resblock_pallas(x_nchw, w1, w2, s1, b1, s2, b2, *,
                    compute_dtype=jnp.bfloat16, out_dtype=None,
                    donate_x=False):
    """ResBlock forward.

    x_nchw : (N, C, H, W), f32 or bf16 (bf16 I/O halves HBM traffic; recommended
             inside a bf16 pipeline). Output dtype defaults to the input dtype.
    w1, w2 : (Cout, Cin) conv weights (= torch weight[:, :, 0, 0])
    sK, bK : folded BatchNorm scale / bias, shape (C,)
    compute_dtype : dtype fed to the MXU (bf16 is native; accumulation is f32)
    donate_x : alias x's HBM buffer for the output (caller must not reuse x).
    """
    N, C, H, W = x_nchw.shape
    HW = H * W
    io_dtype = x_nchw.dtype
    out_dtype = io_dtype if out_dtype is None else out_dtype

    # NCHW is already channels-first: (N, C, HW) is a free view (no transpose
    # passes over HBM) and puts the pixel axis on lanes -> lane-dense stores.
    x3d = x_nchw.reshape(N, C, HW)

    # Fold BN scale into the conv weights in f32; cast only for the MXU.
    w1f = (w1.astype(jnp.float32) * s1[:, None]).astype(compute_dtype)
    w2f = (w2.astype(jnp.float32) * s2[:, None]).astype(compute_dtype)
    b1c = b1.reshape(C, 1).astype(jnp.float32)
    b2c = b2.reshape(C, 1).astype(jnp.float32)

    data_budget, vmem_limit = _vmem_budgets()
    tm = _pick_tile(HW, C, N,
                    io_itemsize=jnp.dtype(io_dtype).itemsize,
                    data_budget_bytes=data_budget)
    grid = (N, _ceil_div(HW, tm))            # partial last block is masked

    in_bytes = jnp.dtype(io_dtype).itemsize
    out_bytes = jnp.dtype(out_dtype).itemsize
    cost = pl.CostEstimate(
        flops=4 * N * C * C * HW,            # two (C,C)x(C,HW) matmuls per image
        transcendentals=0,
        bytes_accessed=N * C * HW * (in_bytes + out_bytes)
                       + 2 * C * C * jnp.dtype(compute_dtype).itemsize)

    aliases = {0: 0} if (donate_x and io_dtype == out_dtype) else {}

    out3d = pl.pallas_call(
        resblock_kernel,
        out_shape=jax.ShapeDtypeStruct((N, C, HW), out_dtype),
        grid_spec=pltpu.PrefetchScalarGridSpec(
            num_scalar_prefetch=0,
            grid=grid,
            in_specs=[
                pl.BlockSpec((None, C, tm), lambda n, j: (n, 0, j)),  # x tile
                pl.BlockSpec((C, C), lambda n, j: (0, 0)),            # w1 (folded)
                pl.BlockSpec((C, 1), lambda n, j: (0, 0)),            # b1
                pl.BlockSpec((C, C), lambda n, j: (0, 0)),            # w2 (folded)
                pl.BlockSpec((C, 1), lambda n, j: (0, 0)),            # b2
            ],
            out_specs=pl.BlockSpec((None, C, tm), lambda n, j: (n, 0, j)),
        ),
        compiler_params=pltpu.CompilerParams(
            dimension_semantics=("parallel", "parallel"),
            vmem_limit_bytes=vmem_limit),
        cost_estimate=cost,
        input_output_aliases=aliases,
    )(x3d, w1f, b1c, w2f, b2c)

    return out3d.reshape(N, C, H, W)


def resblock_reference(x_nchw, w1, w2, s1, b1, s2, b2):
    # Pure f32 reference in the same channels-first form.
    N, C, H, W = x_nchw.shape
    x2 = x_nchw.astype(jnp.float32).reshape(N, C, H * W)
    h = jnp.maximum(jnp.einsum('oi,nip->nop', w1, x2) * s1[:, None] + b1[:, None], 0.0)
    h = jnp.maximum(jnp.einsum('oi,nip->nop', w2, h) * s2[:, None] + b2[:, None], 0.0)
    out = jnp.maximum(h + x2, 0.0)
    return out.reshape(N, C, H, W)


if __name__ == "__main__":
    # Residual add requires inplanes == planes for this (shortcut-free) block.
    # TODO(synk): the original forward references undefined `residual` / `self.relu`;
    # we implement the standard residual-ReLU interpretation (residual = x).
    N, C, H, W = 2, 32, 16, 16
    eps = 1e-5

    key = jax.random.PRNGKey(0)
    kx, kw1, kw2, kg1, kb1, km1, kv1, kg2, kb2, km2, kv2 = jax.random.split(key, 11)

    x = jax.random.normal(kx, (N, C, H, W), dtype=jnp.float32)

    # Conv2d(inplanes, planes, kernel_size=1, bias=False): (out, in, 1, 1)
    conv1_w = jax.random.normal(kw1, (C, C, 1, 1), dtype=jnp.float32) * 0.1
    conv2_w = jax.random.normal(kw2, (C, C, 1, 1), dtype=jnp.float32) * 0.1
    w1 = conv1_w[:, :, 0, 0]   # (Cout, Cin)
    w2 = conv2_w[:, :, 0, 0]

    # SynchronizedBatchNorm2d params (inference form), deterministic init.
    gamma1 = jax.random.normal(kg1, (C,), dtype=jnp.float32) * 0.1 + 1.0
    beta1 = jax.random.normal(kb1, (C,), dtype=jnp.float32) * 0.1
    mean1 = jax.random.normal(km1, (C,), dtype=jnp.float32) * 0.1
    var1 = jax.random.uniform(kv1, (C,), dtype=jnp.float32, minval=0.5, maxval=1.5)
    gamma2 = jax.random.normal(kg2, (C,), dtype=jnp.float32) * 0.1 + 1.0
    beta2 = jax.random.normal(kb2, (C,), dtype=jnp.float32) * 0.1
    mean2 = jax.random.normal(km2, (C,), dtype=jnp.float32) * 0.1
    var2 = jax.random.uniform(kv2, (C,), dtype=jnp.float32, minval=0.5, maxval=1.5)

    # Fold BN into per-channel scale / bias.
    s1 = gamma1 / jnp.sqrt(var1 + eps)
    b1 = beta1 - mean1 * s1
    s2 = gamma2 / jnp.sqrt(var2 + eps)
    b2 = beta2 - mean2 * s2

    ref = resblock_reference(x, w1, w2, s1, b1, s2, b2)

    # f32 I/O + f32 MXU path: tight match with the reference.
    out_f32 = resblock_pallas(x, w1, w2, s1, b1, s2, b2,
                              compute_dtype=jnp.float32)
    out_f32 = jax.block_until_ready(out_f32)
    assert out_f32.shape == (N, C, H, W)
    assert jnp.allclose(out_f32, ref, atol=1e-4, rtol=1e-4)

    # Performance path: bf16 activation I/O + bf16 MXU, f32 accumulation/epilogue.
    x_bf16 = x.astype(jnp.bfloat16)
    out_bf16 = resblock_pallas(x_bf16, w1, w2, s1, b1, s2, b2)
    out_bf16 = jax.block_until_ready(out_bf16)
    assert out_bf16.shape == (N, C, H, W)
    assert out_bf16.dtype == jnp.bfloat16
    assert jnp.allclose(out_bf16.astype(jnp.float32), ref, atol=1e-1, rtol=1e-1)

    print("KERNEL_OK")
</pallas_src>

<mosaic_0001>
module attributes {stable_mosaic.version = 11 : i64} {
  func.func @resblock_kernel(%arg0: i32, %arg1: i32, %arg2: memref<1x32x256xf32, #tpu.memory_space<vmem>>, %arg3: memref<32x32xf32, #tpu.memory_space<vmem>>, %arg4: memref<32x1xf32, #tpu.memory_space<vmem>>, %arg5: memref<32x32xf32, #tpu.memory_space<vmem>>, %arg6: memref<32x1xf32, #tpu.memory_space<vmem>>, %arg7: memref<1x32x256xf32, #tpu.memory_space<vmem>>) attributes {dimension_semantics = [#tpu.dimension_semantics<parallel>, #tpu.dimension_semantics<parallel>], iteration_bounds = array<i64: 2, 1>, scalar_prefetch = 0 : i64, scratch_operands = 0 : i64, tpu.core_type = #tpu.core_type<tc>, window_params = [{transform_indices = @transform_0, window_bounds = array<i64: 1, 32, 256>}, {pipeline_mode = #tpu.pipeline_mode<synchronous>, transform_indices = @transform_1, window_bounds = array<i64: 32, 32>}, {pipeline_mode = #tpu.pipeline_mode<synchronous>, transform_indices = @transform_2, window_bounds = array<i64: 32, 1>}, {pipeline_mode = #tpu.pipeline_mode<synchronous>, transform_indices = @transform_3, window_bounds = array<i64: 32, 32>}, {pipeline_mode = #tpu.pipeline_mode<synchronous>, transform_indices = @transform_4, window_bounds = array<i64: 32, 1>}, {transform_indices = @transform_5, window_bounds = array<i64: 1, 32, 256>}]} {
    %c0 = arith.constant 0 : index
    %c0_0 = arith.constant 0 : index
    %c0_1 = arith.constant 0 : index
    %0 = vector.load %arg2[%c0, %c0_0, %c0_1] : memref<1x32x256xf32, #tpu.memory_space<vmem>>, vector<1x32x256xf32>
    %1 = vector.shape_cast %0 : vector<1x32x256xf32> to vector<32x256xf32>
    %c0_2 = arith.constant 0 : index
    %c0_3 = arith.constant 0 : index
    %2 = vector.load %arg3[%c0_2, %c0_3] : memref<32x32xf32, #tpu.memory_space<vmem>>, vector<32x32xf32>
    %cst = arith.constant dense<0.000000e+00> : vector<32x256xf32>
    %3 = tpu.matmul %2, %1, %cst {dimension_numbers = #tpu.dot_dimension_numbers<[1], [0], [0], [1], [0, 0, 1, 1], [], []>} : vector<32x32xf32>, vector<32x256xf32>, vector<32x256xf32> -> vector<32x256xf32>
    %c0_4 = arith.constant 0 : index
    %c0_5 = arith.constant 0 : index
    %4 = vector.load %arg4[%c0_4, %c0_5] : memref<32x1xf32, #tpu.memory_space<vmem>>, vector<32x1xf32>
    %5 = vector.broadcast %4 : vector<32x1xf32> to vector<32x256xf32>
    %6 = arith.addf %3, %5 : vector<32x256xf32>
    %cst_6 = arith.constant 0.000000e+00 : f32
    %7 = vector.broadcast %cst_6 : f32 to vector<32x256xf32>
    %8 = arith.maximumf %6, %7 : vector<32x256xf32>
    %c0_7 = arith.constant 0 : index
    %c0_8 = arith.constant 0 : index
    %9 = vector.load %arg5[%c0_7, %c0_8] : memref<32x32xf32, #tpu.memory_space<vmem>>, vector<32x32xf32>
    %cst_9 = arith.constant dense<0.000000e+00> : vector<32x256xf32>
    %10 = tpu.matmul %9, %8, %cst_9 {dimension_numbers = #tpu.dot_dimension_numbers<[1], [0], [0], [1], [0, 0, 1, 1], [], []>} : vector<32x32xf32>, vector<32x256xf32>, vector<32x256xf32> -> vector<32x256xf32>
    %c0_10 = arith.constant 0 : index
    %c0_11 = arith.constant 0 : index
    %11 = vector.load %arg6[%c0_10, %c0_11] : memref<32x1xf32, #tpu.memory_space<vmem>>, vector<32x1xf32>
    %12 = vector.broadcast %11 : vector<32x1xf32> to vector<32x256xf32>
    %13 = arith.addf %10, %12 : vector<32x256xf32>
    %cst_12 = arith.constant 0.000000e+00 : f32
    %14 = vector.broadcast %cst_12 : f32 to vector<32x256xf32>
    %15 = arith.maximumf %13, %14 : vector<32x256xf32>
    %16 = arith.addf %15, %1 : vector<32x256xf32>
    %cst_13 = arith.constant 0.000000e+00 : f32
    %17 = vector.broadcast %cst_13 : f32 to vector<32x256xf32>
    %18 = arith.maximumf %16, %17 : vector<32x256xf32>
    %c0_14 = arith.constant 0 : index
    %c0_15 = arith.constant 0 : index
    %c0_16 = arith.constant 0 : index
    %19 = vector.load %arg7[%c0_14, %c0_15, %c0_16] : memref<1x32x256xf32, #tpu.memory_space<vmem>>, vector<1x32x256xf32>
    %20 = vector.shape_cast %19 : vector<1x32x256xf32> to vector<32x256xf32>
    %21 = vector.shape_cast %18 : vector<32x256xf32> to vector<1x32x256xf32>
    tpu.vector_store %arg7[%c0_14, %c0_15, %c0_16], %21 {strides = array<i32>} : memref<1x32x256xf32, #tpu.memory_space<vmem>>, vector<1x32x256xf32>,
    return
  }
  func.func @transform_0(%arg0: i32, %arg1: i32) -> (i32, i32, i32) {
    %c0_i32 = arith.constant 0 : i32
    %c0_i32_0 = arith.constant 0 : i32
    return %arg0, %c0_i32, %arg1 : i32, i32, i32
  }
  func.func @transform_1(%arg0: i32, %arg1: i32) -> (i32, i32) {
    %c0_i32 = arith.constant 0 : i32
    %c0_i32_0 = arith.constant 0 : i32
    %c0_i32_1 = arith.constant 0 : i32
    return %c0_i32, %c0_i32_0 : i32, i32
  }
  func.func @transform_2(%arg0: i32, %arg1: i32) -> (i32, i32) {
    %c0_i32 = arith.constant 0 : i32
    %c0_i32_0 = arith.constant 0 : i32
    %c0_i32_1 = arith.constant 0 : i32
    return %c0_i32, %c0_i32_0 : i32, i32
  }
  func.func @transform_3(%arg0: i32, %arg1: i32) -> (i32, i32) {
    %c0_i32 = arith.constant 0 : i32
    %c0_i32_0 = arith.constant 0 : i32
    %c0_i32_1 = arith.constant 0 : i32
    return %c0_i32, %c0_i32_0 : i32, i32
  }
  func.func @transform_4(%arg0: i32, %arg1: i32) -> (i32, i32) {
    %c0_i32 = arith.constant 0 : i32
    %c0_i32_0 = arith.constant 0 : i32
    %c0_i32_1 = arith.constant 0 : i32
    return %c0_i32, %c0_i32_0 : i32, i32
  }
  func.func @transform_5(%arg0: i32, %arg1: i32) -> (i32, i32, i32) {
    %c0_i32 = arith.constant 0 : i32
    %c0_i32_0 = arith.constant 0 : i32
    return %arg0, %c0_i32, %arg1 : i32, i32, i32
  }
}

</mosaic_0001>

<bundles_post_ra>
// kernel: tpu_custom_call.1
= control target key start
LH: loop header
LB: loop body
LE: loop exit
PB: predicated region body
PF: predicated region fallthrough
CT: control target
= control target key end

     0   :  { %10 = vsyncpa [#allocation3], 0  ;;  %s1222_s0 = inlined_call_operand.hbm [shape: f32[2,32,256], index: 0, kind: input, shape index: {}]   ;;  %s1223_s1 = inlined_call_operand.vmem [shape: f32[32,32], index: 1, kind: input, shape index: {}]   ;;  %s1224_s2 = inlined_call_operand.vmem [shape: f32[32,1], index: 2, kind: input, shape index: {}]   ;;  %s1225_s3 = inlined_call_operand.vmem [shape: f32[32,32], index: 3, kind: input, shape index: {}]   ;;  %s1226_s4 = inlined_call_operand.vmem [shape: f32[32,1], index: 4, kind: input, shape index: {}]   ;;  %s1227_s5 = inlined_call_operand.hbm [shape: f32[2,32,256], index: 5, kind: output, shape index: {}]  }
   0x1   :  { %12 = vsyncpa [#allocation3 + $0x1], 0 }
   0x2   :  { %13 = vsyncpa [#allocation4], 0 }
   0x3   :  { %15 = vsyncpa [#allocation4 + $0x1], 0  ;;  %s936_s18 = smov 0   ;;  %s938_s19 = smov 0  }
   0x4   :  { %s940_s20 = smov 0   ;;  %s942_s21 = smov 0  }
   0x5   :  { %s944_s22 = smov 0   ;;  %s946_s23 = smov 0  }
   0x6 LB: > { %s673_s24 = sadd.s32 4294967295, %s896_s23   ;;  %s674_s25 = sadd.s32 4294967294, %s896_s23   ;;  %s896_s23 = sphi %s946_s23, %s21_s23   ;;  %s892_s22 = sphi %s944_s22, %s1242_s22   ;;  %s888_s21 = sphi %s942_s21, %s1241_s21   ;;  %s884_s20 = sphi %s940_s20, %s1240_s20   ;;  %s880_s19 = sphi %s938_s19, %s1239_s19   ;;  %s876_s18 = sphi %s936_s18, %s1238_s18  }
   0x7   : > { %s33_s26 = sadd.s32 1, %s892_s22  ;;  %s42_s27 = sadd.s32 1, %s884_s20 }
   0x8   : > { %p35_p0 = scmp.ge.s32.totalorder %s33_s26, 2  ;;  %p49_p1 = scmp.ne.s32.totalorder %s884_s20, %s880_s19 }
   0x9   : > { %p50_p2 = scmp.eq.s32.totalorder %s896_s23, 0  ;;  %p55_p3 = scmp.ne.s32.totalorder %s880_s19, %s876_s18 }
   0xa   : > { %s1244_s26 = smov (%p35_p0, %s33_s26), 0  ;;  %p56_p5 = scmp.eq.s32.totalorder %s673_s24, 0 }
   0xb   : > { %p977_p4 = por %p50_p2, %p49_p1  ;;  %s37_s29 = ssub.s32 %s892_s22, %s1244_s26 }
   0xc   : > { %p165_p6 = scmp.eq.s32.totalorder %s673_s24, 1  ;;  %p40_p7 = scmp.eq.s32.totalorder %s37_s29, 0 }
   0xd   : > { %p983_p8 = por %p56_p5, %p55_p3  ;;  %p171_p10 = scmp.eq.s32.totalorder %s674_s25, 1 }
   0xe   : > { %p987_p9 = por %p165_p6, %p49_p1  ;;  %p726_p13 = scmp.lt.s32.totalorder %s896_s23, 2 }
   0xf   : > { %s992_s7 = scalar_select %p40_p7, %s884_s20, %s42_s27  }
  0x10   : > { %s1231_s6 = scalar_select %p987_p9, 1, 0 }
  0x11   : > { %p994_p11 = por %p171_p10, %p55_p3  ;;  %s203_s9 = sand.u32 1, %s884_s20  }
  0x12   : > { %s677_s10 = sshll.u32 %s203_s9, 6  ;;  %s696_s11 = sshll.u32 %s892_s22, 10 }
  0x13   : > { %s1232_s8 = scalar_select %p994_p11, 1, 0 }
  0x14   : > { %s1005_s14 = scalar_lea.hbm %s1222_s0, %s696_s11  ;;  %s207_s15 = scalar_lea.vmem [#allocation2], %s677_s10 }
  0x15   : > { %s216_s16 = sshll.u32 %s207_s15, 4  ;;  %p1011_p0 = pnand %p726_p13, %p977_p4  ;;  %s1007_s16 = int_to_ptr.vmem [resolvable:$true] %s216_s16 }
  0x16   : > { %s1016_s24 = scalar_lea.sflag [#allocation3], %s203_s9  ;;  %s784_s25 = scalar_lea.hbm %s1005_s14, 1024 }
  0x17   : > { %p785_p2 = scmp.ne.s32.totalorder %s1005_s14, %s784_s25  ;;  %p786_p3 = pneg %p1011_p0 }
  0x18   : > { %s789_s28 = scalar_lea.hbm %s1222_s0, 2048  ;;  %p790_p4 = scmp.lt.u32.totalorder %s1005_s14, %s1222_s0 }
  0x19   : > { %p787_p5 = pnand %p786_p3, %p785_p2  ;;  %p791_p7 = scmp.lt.u32.totalorder %s789_s28, %s784_s25 }
  0x1a   : > { %p793_p13 = scmp.lt.u32.totalorder %s784_s25, %s1005_s14 }
  0x1b   : > { %p788_p6 = pneg %p787_p5  ;;  %p792_p10 = por %p791_p7, %p790_p4 }
  0x1d   : > { %p794_p12 = por %p793_p13, %p792_p10 }
  0x1f   : > { %p795_p1 = pnand %p794_p12, %p788_p6 }
  0x21   : > { %798 = shalt.err (!%p795_p1)
}
  0x22   : > { %s799_s9 = scalar_lea.vmem %s1007_s16, 1024  ;;  %s898_s12 = smov [#allocation2]  }
  0x23   : > { %p800_p2 = scmp.ne.s32.totalorder %s1007_s16, %s799_s9  ;;  %s804_s13 = sshll.u32 %s898_s12, 4  ;;  %s805_s13 = int_to_ptr.vmem [resolvable:$false] %s804_s13 }
  0x24   : > { %s806_s15 = scalar_lea.vmem %s805_s13, 2048  ;;  %p807_p9 = scmp.lt.s32.totalorder %s1007_s16, %s805_s13 }
  0x25   : > { %p802_p5 = pnand %p800_p2, %p786_p3  ;;  %p808_p4 = scmp.lt.s32.totalorder %s806_s15, %s799_s9 }
  0x27   : > { %p803_p11 = pneg %p802_p5  ;;  %p809_p7 = por %p808_p4, %p807_p9 }
  0x29   : > { %p810_p10 = pnand %p809_p7, %p803_p11 }
  0x2b   : > { %813 = shalt.err (!%p810_p10)
}
  0x2c   : > { %s899_s25 = smov 256   ;;  %s900_s27 = smov 16  }
  0x2d   : > { %721 = dma.hbm_to_vmem [thread:$0]  (!%p1011_p0), %s1005_s14, 1024, %s1007_s16, %s1016_s24, %s899_s25, %s899_s25, %s900_s27  }
  0x2e   : > { %p224_p12 = scmp.lt.s32.totalorder %s896_s23, 3  ;;  %p1234_p1 = scmp.ge.s32.totalorder %s896_s23, 1 }
  0x30   : > { %p225_p3 = pnand %p1234_p1, %p224_p12 }
  0x31   : > { %s1048_s29 = sand.u32 (!%p225_p3), 1, %s880_s19  }
  0x32   : > { %228 = sbr.rel (%p225_p3) target bundleno = 552 (0x228), region = 40  ;;  %s681_s28 = sshll.u32 (!%p225_p3), %s1048_s29, 6 }
  0x33   : > { %s231_s10 = scalar_lea.sflag (!%p225_p3), [#allocation3], %s1048_s29  ;;  %s234_s11 = scalar_lea.vmem (!%p225_p3), [#allocation2], %s681_s28 }
  0x39   : > { %867 = dma.done.wait (%p983_p8), %s231_s10, 1024  }
  0x3a   : > { %869 = vsyncadd (%p983_p8), %s231_s10, 4294966272  ;;  %v901_v0 = vmov 0.0   ;;  %v902_v1 = vmov 0   ;;  %v1060_v2 = vld [vmem:[%s234_s11 + $0x8] sm:$0xff]  ;;  %v1062_v3 = vld [vmem:[%s234_s11 + $0x18] sm:$0xff]  ;;  %vm299_vm0 = vcmask 261120  }
  0x3b   : > { %376 = vmatprep.mubr.f32.mxu0 %v901_v0  ;;  %782 = vset.pattern.permute.xlu0 %v902_v1  ;;  %v1064_v4 = vld [vmem:[%s234_s11] sm:$0xff]  ;;  %v698_v5 = vpack.c.bf16 %v1062_v3, %v1060_v2  ;;  %v1068_v6 = vld [vmem:[%s234_s11 + $0x10] sm:$0xff]  ;;  %v1070_v7 = vld [vmem:[%s234_s11 + $0x28] sm:$0xff]  ;;  %s1150_s12 = scalar_lea.vmem [#allocation5], %s681_s28  ;;  %s697_s13 = sshll.u32 %s888_s21, 10 }
  0x3c   : > { %783 = vset.pattern.permute.xlu1 %v902_v1  ;;  %513 = vmatprep.mubr.f32.mxu1 %v901_v0  ;;  %v1072_v8 = vld [vmem:[%s234_s11 + $0x38] sm:$0xff]  ;;  %v700_v9 = vpack.c.bf16 %v1068_v6, %v1064_v4  ;;  %v1078_v11 = vld [vmem:[%s234_s11 + $0x20] sm:$0xff]  ;;  %v1080_v12 = vld [vmem:[%s234_s11 + $0x30] sm:$0xff]  ;;  %s586_s28 = sshll.u32 %s1150_s12, 4  ;;  %s1169_s27 = scalar_lea.hbm %s1227_s5, %s697_s13  ;;  %s1171_s28 = int_to_ptr.vmem [resolvable:$true] %s586_s28 }
  0x3d   : > { %v702_v10 = vpack.c.bf16 %v1072_v8, %v1070_v7  ;;  %699 = vmatprep.subr.bf16.mxu0 %v698_v5  ;;  %v704_v13 = vpack.c.bf16 %v1080_v12, %v1078_v11  ;;  %v275_v14 = vld [vmem:[%s1224_s2] sm:$0xff]  ;;  %v277_v15 = vld [vmem:[%s1224_s2 + $0x10] sm:$0xff]  ;;  %v276_v16 = vld [vmem:[%s1224_s2 + $0x8] sm:$0xff]  ;;  %s571_s21 = scalar_lea.sflag [#allocation4], %s1048_s29  ;;  %s814_s10 = scalar_lea.vmem %s1171_s28, 1024 }
  0x3e   : > { %701 = vmatpush1.bf16.msra.mxu0 %v700_v9  ;;  %281 = vperm.xlu0 %782, %v275_v14   ;;  %v278_v17 = vld [vmem:[%s1224_s2 + $0x18] sm:$0xff]  ;;  %v271_v18 = vld [vmem:[%s1223_s1] sm:$0xff]  ;;  %v414_v20 = vld [vmem:[%s1226_s4 + $0x8] sm:$0xff]  ;;  %p815_p8 = scmp.ne.s32.totalorder %s1171_s28, %s814_s10  ;;  %p1235_p9 = scmp.ne.s32.totalorder %s1231_s6, 0 }
  0x3f   : > { %703 = vmatprep.subr.bf16.mxu0 %v702_v10  ;;  %291 = vperm.xlu1 %783, %v277_v15   ;;  %v413_v19 = vld [vmem:[%s1226_s4] sm:$0xff]  ;;  %v272_v21 = vld [vmem:[%s1223_s1 + $0x8] sm:$0xff]  ;;  %v415_v22 = vld [vmem:[%s1226_s4 + $0x10] sm:$0xff]  ;;  %s903_s11 = smov [#allocation5]  }
  0x40   : > { %v416_v23 = vld [vmem:[%s1226_s4 + $0x18] sm:$0xff]  ;;  %v273_v24 = vld [vmem:[%s1223_s1 + $0x10] sm:$0xff]  ;;  %v409_v58 = vld [vmem:[%s1225_s3] sm:$0xff]  ;;  %p816_p11 = pnand %p815_p8, %p1235_p9  ;;  %s818_s30 = sshll.u32 %s903_s11, 4  ;;  %s819_s30 = int_to_ptr.vmem [resolvable:$false] %s818_s30 }
  0x41   : > { %v274_v25 = vld [vmem:[%s1223_s1 + $0x18] sm:$0xff]  ;;  %v410_v59 = vld [vmem:[%s1225_s3 + $0x8] sm:$0xff]  ;;  %v411_v60 = vld [vmem:[%s1225_s3 + $0x10] sm:$0xff]  ;;  %s820_s14 = scalar_lea.vmem %s819_s30, 2048  ;;  %p821_p6 = scmp.lt.s32.totalorder %s1171_s28, %s819_s30 }
  0x42   : > { %705 = vmatpush1.bf16.msra.mxu0 %v704_v13  ;;  %286 = vperm.xlu0 %782, %v276_v16   ;;  %v412_v61 = vld [vmem:[%s1225_s3 + $0x18] sm:$0xff]  ;;  %p817_p0 = pneg %p816_p11  ;;  %p822_p13 = scmp.lt.s32.totalorder %s820_s14, %s814_s10 }
  0x43   : > { %296 = vperm.xlu1 %783, %v278_v17  }
  0x44   : > { %p823_p2 = por %p822_p13, %p821_p6 }
  0x45   : > { %683 = vmatmul.mubr.msk.f32.vlgmr.msra.gmra.mrb[0].mxu0 %vm299_vm0, %v271_v18 }
  0x46   : > { %382 = vmatprep.mubr.f32.mxu0 %v901_v0  ;;  %419 = vperm.xlu0 %782, %v413_v19   ;;  %p824_p5 = pnand %p823_p2, %p817_p0 }
  0x47   : > { %424 = vperm.xlu1 %783, %v414_v20  }
  0x49   : > { %684 = vmatmul.mubr.msk.f32.gmra.mrb[2].mxu0 %vm299_vm0, %v272_v21 }
  0x4a   : > { %388 = vmatprep.mubr.f32.mxu0 %v901_v0  ;;  %429 = vperm.xlu0 %782, %v415_v22  }
  0x4b   : > { %434 = vperm.xlu1 %783, %v416_v23  }
  0x4d   : > { %685 = vmatmul.mubr.msk.f32.gmra.mrb[4].mxu0 %vm299_vm0, %v273_v24 }
  0x4e   : > { %394 = vmatprep.mubr.f32.mxu0 %v901_v0 }
  0x51   : > { %686 = vmatmul.mubr.msk.f32.gmra.mrb[6].mxu0 %vm299_vm0, %v274_v25 }
  0xbd   : > { %v282_v26 = vpop.permute.xlu0 %281 }
  0xbe   : > { %v292_v35 = vpop.permute.xlu1 %291 }
  0xc1   : > { %v287_v30 = vpop.permute.xlu0 %286 }
  0xc2   : > { %v297_v46 = vpop.permute.xlu1 %296 }
  0xc5   : > { %v420_v62 = vpop.permute.xlu0 %419 }
  0xc6   : > { %v425_v13 = vpop.permute.xlu1 %424 }
  0xc9   : > { %v430_v22 = vpop.permute.xlu0 %429 }
 0x118   : > { %v378_v27 = vpop.f32.mrb[0].mxu0 }
 0x119   : > { %v380_v28 = vpop.f32.mrb[1].mxu0  ;;  %v379_v29 = vadd.f32 %v378_v27, %v282_v26 }
 0x11a   : > { %v381_v31 = vadd.f32 %v380_v28, %v282_v26 }
 0x11b   : > { %v401_v37 = vmax.f32 %v379_v29, 0.0 }
 0x11c   : > { %v384_v32 = vpop.f32.mrb[2].mxu0  ;;  %v402_v39 = vmax.f32 %v381_v31, 0.0  ;;  %v435_v31 = vpop.permute.xlu1 %434 }
 0x11d   : > { %v385_v33 = vadd.f32 %v384_v32, %v287_v30  ;;  %v386_v34 = vpop.f32.mrb[3].mxu0 }
 0x11e   : > { %v387_v36 = vadd.f32 %v386_v34, %v287_v30 }
 0x11f   : > { %v403_v38 = vmax.f32 %v385_v33, 0.0 }
 0x120   : > { %v404_v40 = vmax.f32 %v387_v36, 0.0  ;;  %v390_v41 = vpop.f32.mrb[4].mxu0 }
 0x121   : > { %v392_v42 = vpop.f32.mrb[5].mxu0  ;;  %v708_v43 = vpack.c.bf16 %v403_v38, %v401_v37  ;;  %v391_v45 = vadd.f32 %v390_v41, %v292_v35 }
 0x122   : > { %v706_v44 = vpack.c.bf16 %v404_v40, %v402_v39  ;;  %v393_v47 = vadd.f32 %v392_v42, %v292_v35 }
 0x123   : > { %v405_v52 = vmax.f32 %v391_v45, 0.0 }
 0x124   : > { %v396_v48 = vpop.f32.mrb[6].mxu0  ;;  %707 = vmatprep.subr.bf16.mxu1 %v706_v44  ;;  %v406_v54 = vmax.f32 %v393_v47, 0.0 }
 0x125   : > { %v397_v49 = vadd.f32 %v396_v48, %v297_v46  ;;  %v398_v50 = vpop.f32.mrb[7].mxu0  ;;  %709 = vmatpush1.bf16.msra.mxu1 %v708_v43 }
 0x126   : > { %v399_v51 = vadd.f32 %v398_v50, %v297_v46 }
 0x127   : > { %v407_v53 = vmax.f32 %v397_v49, 0.0 }
 0x128   : > { %v408_v55 = vmax.f32 %v399_v51, 0.0 }
 0x129   : > { %v712_v56 = vpack.c.bf16 %v407_v53, %v405_v52 }
 0x12a   : > { %v710_v57 = vpack.c.bf16 %v408_v55, %v406_v54 }
 0x12c   : > { %711 = vmatprep.subr.bf16.mxu1 %v710_v57 }
 0x12d   : > { %713 = vmatpush1.bf16.msra.mxu1 %v712_v56 }
 0x130   : > { %687 = vmatmul.mubr.msk.f32.vlgmr.msra.gmra.mrb[0].mxu1 %vm299_vm0, %v409_v58 }
 0x131   : > { %519 = vmatprep.mubr.f32.mxu1 %v901_v0 }
 0x134   : > { %688 = vmatmul.mubr.msk.f32.gmra.mrb[2].mxu1 %vm299_vm0, %v410_v59 }
 0x135   : > { %525 = vmatprep.mubr.f32.mxu1 %v901_v0 }
 0x138   : > { %689 = vmatmul.mubr.msk.f32.gmra.mrb[4].mxu1 %vm299_vm0, %v411_v60 }
 0x139   : > { %531 = vmatprep.mubr.f32.mxu1 %v901_v0 }
 0x13c   : > { %690 = vmatmul.mubr.msk.f32.gmra.mrb[6].mxu1 %vm299_vm0, %v412_v61 }
 0x203   : > { %v515_v63 = vpop.f32.mrb[0].mxu1 }
 0x204   : > { %v516_v1 = vadd.f32 %v515_v63, %v420_v62  ;;  %v517_v5 = vpop.f32.mrb[1].mxu1 }
 0x205   : > { %v518_v9 = vadd.f32 %v517_v5, %v420_v62 }
 0x206   : > { %v538_v10 = vmax.f32 %v516_v1, 0.0 }
 0x207   : > { %v539_v14 = vmax.f32 %v518_v9, 0.0  ;;  %v521_v15 = vpop.f32.mrb[2].mxu1 }
 0x208   : > { %v546_v16 = vadd.f32 %v538_v10, %v1064_v4  ;;  %v522_v17 = vadd.f32 %v521_v15, %v425_v13  ;;  %v523_v0 = vpop.f32.mrb[3].mxu1 }
 0x209   : > { %v547_v18 = vadd.f32 %v539_v14, %v1060_v2  ;;  %v524_v19 = vadd.f32 %v523_v0, %v425_v13 }
 0x20a   : > { %v554_v20 = vmax.f32 %v546_v16, 0.0  ;;  %v540_v21 = vmax.f32 %v522_v17, 0.0 }
 0x20b   : > { %v555_v23 = vmax.f32 %v547_v18, 0.0  ;;  %v541_v24 = vmax.f32 %v524_v19, 0.0  ;;  %v527_v25 = vpop.f32.mrb[4].mxu1 }
 0x20c   : > { %562 = vst [vmem:[%s1150_s12] sm:$0xff] %v554_v20  ;;  %v548_v4 = vadd.f32 %v540_v21, %v1068_v6  ;;  %v528_v26 = vadd.f32 %v527_v25, %v430_v22  ;;  %v529_v27 = vpop.f32.mrb[5].mxu1 }
 0x20d   : > { %563 = vst [vmem:[%s1150_s12 + $0x8] sm:$0xff] %v555_v23  ;;  %v549_v2 = vadd.f32 %v541_v24, %v1062_v3  ;;  %v530_v28 = vadd.f32 %v529_v27, %v430_v22 }
 0x20e   : > { %v556_v29 = vmax.f32 %v548_v4, 0.0  ;;  %v542_v30 = vmax.f32 %v528_v26, 0.0 }
 0x20f   : > { %v557_v32 = vmax.f32 %v549_v2, 0.0  ;;  %v543_v33 = vmax.f32 %v530_v28, 0.0  ;;  %v533_v34 = vpop.f32.mrb[6].mxu1 }
 0x210   : > { %564 = vst [vmem:[%s1150_s12 + $0x10] sm:$0xff] %v556_v29  ;;  %v550_v6 = vadd.f32 %v542_v30, %v1078_v11  ;;  %v534_v35 = vadd.f32 %v533_v34, %v435_v31  ;;  %v535_v36 = vpop.f32.mrb[7].mxu1 }
 0x211   : > { %565 = vst [vmem:[%s1150_s12 + $0x18] sm:$0xff] %v557_v32  ;;  %v551_v37 = vadd.f32 %v543_v33, %v1070_v7  ;;  %v536_v3 = vadd.f32 %v535_v36, %v435_v31 }
 0x212   : > { %v558_v38 = vmax.f32 %v550_v6, 0.0  ;;  %v544_v39 = vmax.f32 %v534_v35, 0.0 }
 0x213   : > { %v559_v40 = vmax.f32 %v551_v37, 0.0  ;;  %v545_v41 = vmax.f32 %v536_v3, 0.0 }
 0x214   : > { %566 = vst [vmem:[%s1150_s12 + $0x20] sm:$0xff] %v558_v38  ;;  %v552_v42 = vadd.f32 %v544_v39, %v1080_v12 }
 0x215   : > { %567 = vst [vmem:[%s1150_s12 + $0x28] sm:$0xff] %v559_v40  ;;  %v553_v11 = vadd.f32 %v545_v41, %v1072_v8 }
 0x216   : > { %v560_v43 = vmax.f32 %v552_v42, 0.0 }
 0x217   : > { %v561_v7 = vmax.f32 %v553_v11, 0.0 }
 0x218   : > { %568 = vst [vmem:[%s1150_s12 + $0x30] sm:$0xff] %v560_v43 }
 0x219   : > { %569 = vst [vmem:[%s1150_s12 + $0x38] sm:$0xff] %v561_v7 }
 0x21a   : > { %827 = shalt.err (!%p824_p5)
}
 0x21b   : > { %s828_s16 = scalar_lea.hbm %s1169_s27, 1024  ;;  %s832_s9 = scalar_lea.hbm %s1227_s5, 2048 }
 0x21c   : > { %p829_p4 = scmp.ne.s32.totalorder %s1169_s27, %s828_s16  ;;  %p833_p12 = scmp.lt.u32.totalorder %s1169_s27, %s1227_s5 }
 0x21d   : > { %p834_p1 = scmp.lt.u32.totalorder %s832_s9, %s828_s16  ;;  %p836_p8 = scmp.lt.u32.totalorder %s828_s16, %s1169_s27 }
 0x21e   : > { %p830_p7 = pnand %p829_p4, %p1235_p9 }
 0x21f   : > { %p835_p3 = por %p834_p1, %p833_p12 }
 0x220   : > { %p831_p10 = pneg %p830_p7 }
 0x221   : > { %p837_p11 = por %p836_p8, %p835_p3 }
 0x223   : > { %p838_p0 = pnand %p837_p11, %p831_p10 }
 0x225   : > { %841 = shalt.err (!%p838_p0)
}
 0x226   : > { %s904_s15 = smov 256   ;;  %s905_s25 = smov 16  }
 0x227   : > { %716 = dma.vmem_to_hbm [thread:$0]  (%p1235_p9), %s1171_s28, 1024, %s1169_s27, %s571_s21, %s904_s15, %s904_s15, %s905_s25  }
 0x228 PF: > { %s601_s10 = sand.u32 1, %s876_s18   ;;  %p1236_p6 = scmp.ne.s32.totalorder %s1232_s8, 0 }
 0x229   : > { %p1237_p13 = scmp.ge.s32.totalorder %s896_s23, 2  ;;  %s602_s11 = scalar_lea.sflag [#allocation4], %s601_s10 }
 0x22b   : > { %p723_p2 = pnand %p1237_p13, %p1236_p6 }
 0x22d   : > { %871 = dma.done.wait (!%p723_p2), %s602_s11, 1024  }
 0x22e   : > { %873 = vsyncadd (!%p723_p2), %s602_s11, 4294966272  ;;  %s21_s23 = sadd.s32 1, %s896_s23   ;;  %s1238_s18 = smov %s880_s19 }
 0x22f   : > { %p18_p5 = scmp.ge.s32.totalorder %s21_s23, 4   ;;  %s1239_s19 = smov %s884_s20 }
 0x230   : > { %s1240_s20 = smov %s992_s7  ;;  %s1241_s21 = smov %s892_s22 }
 0x231   : > { %s1242_s22 = smov %s1244_s26  ;;  %20 = sbr.rel (!%p18_p5) target bundleno = 6 (0x6), region = 85 }
 0x238   :  { %607 = vsyncpa [#allocation3], 1 }
 0x239   :  { %609 = vsyncpa [#allocation3 + $0x1], 1 }
 0x23a   :  { %610 = vsyncpa [#allocation4], 1 }
 0x23b   :  { %612 = vsyncpa [#allocation4 + $0x1], 1 }

</bundles_post_ra>
